<compile_context>
chip_gen: v7x
topology: tpu7x:2x2x1
jax: 0.10.0
libtpu: 0.0.40
codegen_flags: <defaults>
</compile_context>

<pallas_src>
import functools

import jax
import jax.numpy as jnp
from jax import lax
from jax.experimental import pallas as pl
from jax.experimental.pallas import tpu as pltpu


def _round_up(x, m):
    return (x + m - 1) // m * m


def _model_kernel(idx_ref, emb_ref, w1_ref, b1_ref, w2_ref, b2_ref, out_ref,
                  x_ref, *, matmul_dtype):
    """One grid step == one tile of `tn` tokens.

    idx_ref : SMEM [N_pad]   int32   scalar-prefetched token ids (full array)
    emb_ref : VMEM [Vp, Dp]  f32     zero-padded embedding table
    w1_ref  : VMEM [Dp, Dp]  f32     b1_ref : VMEM [1, Dp] f32
    w2_ref  : VMEM [Dp, Vp]  f32     b2_ref : VMEM [1, Vp] f32 (-1e30 pad cols)
    out_ref : VMEM [tn, Vp]  f32     softmax probabilities
    x_ref   : VMEM [tn, Dp]  f32     scratch: gathered embedding rows
    """
    tn = out_ref.shape[0]
    base = pl.program_id(0) * tn

    # ---- embedding gather: copy only the tn rows this tile needs -----------
    def gather_row(t, carry):
        tok = idx_ref[base + t]                      # scalar read from SMEM
        x_ref[pl.ds(t, 1), :] = emb_ref[pl.ds(tok, 1), :]
        return carry

    lax.fori_loop(0, tn, gather_row, 0)

    # Read biases once (single broadcast per tile, no per-use re-broadcast).
    x = x_ref[...]
    w1 = w1_ref[...]
    w2 = w2_ref[...]
    b1 = b1_ref[...]
    b2 = b2_ref[...]

    use_cast = jnp.dtype(matmul_dtype) != jnp.dtype(jnp.float32)
    if use_cast:
        # bf16 at the MXU inputs only; accumulation / bias / ReLU / softmax f32.
        x = x.astype(matmul_dtype)
        w1 = w1.astype(matmul_dtype)
        w2 = w2.astype(matmul_dtype)

    # ---- Linear -> ReLU ------------------------------------------------------
    h = jnp.dot(x, w1, preferred_element_type=jnp.float32) + b1
    h = jnp.maximum(h, 0.0)
    if use_cast:
        h = h.astype(matmul_dtype)

    # ---- Linear -> logits ----------------------------------------------------
    a = jnp.dot(h, w2, preferred_element_type=jnp.float32) + b2      # [tn, Vp]

    # ---- softmax over the (padded) vocab dim ---------------------------------
    # Padded columns carry a -1e30 bias => exp(...) == 0, so they contribute
    # nothing to max / sum and get exactly zero probability.
    m = jnp.max(a, axis=-1, keepdims=True)
    e = jnp.exp(a - m)
    denom = jnp.sum(e, axis=-1, keepdims=True)
    out_ref[...] = e * pl.reciprocal(denom, approx=True)


def simple_broken_model_forward(idx, params, *, token_tile=128,
                                matmul_dtype=jnp.float32):
    """idx: int32 [B, T]. Returns softmax 'logits' [B, T, vocab_size]."""
    emb, w1, b1, w2, b2 = (params["embedding"], params["w1"], params["b1"],
                           params["w2"], params["b2"])
    B, T = idx.shape
    V, D = emb.shape
    N = B * T
    assert token_tile % 8 == 0

    # Lane-dense padding: d_model / vocab up to 128, tokens up to the tile.
    Dp = _round_up(D, 128)
    Vp = _round_up(V, 128)
    Np = _round_up(N, token_tile)

    f32 = jnp.float32
    idx_pad = jnp.zeros((Np,), jnp.int32).at[:N].set(
        idx.reshape(N).astype(jnp.int32))
    emb_p = jnp.zeros((Vp, Dp), f32).at[:V, :D].set(emb.astype(f32))
    w1_p = jnp.zeros((Dp, Dp), f32).at[:D, :D].set(w1.astype(f32))
    b1_p = jnp.zeros((1, Dp), f32).at[:, :D].set(b1.astype(f32).reshape(1, D))
    w2_p = jnp.zeros((Dp, Vp), f32).at[:D, :V].set(w2.astype(f32))
    # Padded vocab columns -> huge negative logit so softmax ignores them.
    b2_p = jnp.full((1, Vp), -1e30, f32).at[:, :V].set(
        b2.astype(f32).reshape(1, V))

    kernel = functools.partial(_model_kernel, matmul_dtype=matmul_dtype)

    out = pl.pallas_call(
        kernel,
        out_shape=jax.ShapeDtypeStruct((Np, Vp), jnp.float32),
        grid_spec=pltpu.PrefetchScalarGridSpec(
            num_scalar_prefetch=1,                       # token ids -> SMEM
            grid=(Np // token_tile,),
            in_specs=[
                pl.BlockSpec((Vp, Dp), lambda i, ids: (0, 0)),   # embedding
                pl.BlockSpec((Dp, Dp), lambda i, ids: (0, 0)),   # w1
                pl.BlockSpec((1, Dp), lambda i, ids: (0, 0)),    # b1
                pl.BlockSpec((Dp, Vp), lambda i, ids: (0, 0)),   # w2
                pl.BlockSpec((1, Vp), lambda i, ids: (0, 0)),    # b2
            ],
            out_specs=pl.BlockSpec((token_tile, Vp), lambda i, ids: (i, 0)),
            scratch_shapes=[pltpu.VMEM((token_tile, Dp), jnp.float32)],
        ),
        compiler_params=pltpu.CompilerParams(
            dimension_semantics=("parallel",),
            vmem_limit_bytes=32 * 1024 * 1024,
        ),
    )(idx_pad, emb_p, w1_p, b1_p, w2_p, b2_p)

    # Drop padded token rows and padded vocab columns.
    return out[:N, :V].reshape(B, T, V)


def init_params(key, vocab_size, d_model):
    k_emb, k_w1, k_b1, k_w2, k_b2 = jax.random.split(key, 5)
    scale1 = 1.0 / jnp.sqrt(d_model)
    return {
        # nn.Embedding(vocab_size, d_model): weight [V, D]
        "embedding": jax.random.normal(k_emb, (vocab_size, d_model), jnp.float32),
        # nn.Linear(d_model, d_model): stored transposed [in, out]
        "w1": jax.random.uniform(k_w1, (d_model, d_model), jnp.float32, -scale1, scale1),
        "b1": jax.random.uniform(k_b1, (d_model,), jnp.float32, -scale1, scale1),
        # nn.Linear(d_model, vocab_size): stored transposed [in, out]
        "w2": jax.random.uniform(k_w2, (d_model, vocab_size), jnp.float32, -scale1, scale1),
        "b2": jax.random.uniform(k_b2, (vocab_size,), jnp.float32, -scale1, scale1),
    }


def _reference(idx, params):
    x = jnp.take(params["embedding"], idx, axis=0)
    h = jnp.maximum(x @ params["w1"] + params["b1"], 0.0)
    a = h @ params["w2"] + params["b2"]
    return jax.nn.softmax(a, axis=-1)


if __name__ == "__main__":
    config = {"vocab_size": 64, "d_model": 32}
    B, T = 2, 16

    key = jax.random.PRNGKey(0)
    k_params, k_idx = jax.random.split(key)
    params = init_params(k_params, config["vocab_size"], config["d_model"])
    idx = jax.random.randint(k_idx, (B, T), 0, config["vocab_size"], dtype=jnp.int32)

    ref = _reference(idx, params)

    # f32 MXU path — matches the reference up to the EUP approx-reciprocal used
    # for the softmax denominator (hence rtol 5e-3 instead of 1e-5).
    probs = simple_broken_model_forward(idx, params)
    probs = jax.block_until_ready(probs)
    assert probs.shape == (B, T, config["vocab_size"])
    assert bool(jnp.allclose(probs, ref, rtol=5e-3, atol=1e-6))

    # bf16-at-the-MXU path (recommended on v6e / v7x at real model sizes).
    probs_bf16 = simple_broken_model_forward(idx, params,
                                             matmul_dtype=jnp.bfloat16)
    probs_bf16 = jax.block_until_ready(probs_bf16)
    assert bool(jnp.allclose(probs_bf16, ref, atol=5e-2))

    print("KERNEL_OK")
</pallas_src>

<mosaic_0001>
module attributes {stable_mosaic.version = 11 : i64} {
  func.func @_model_kernel(%arg0: i32, %arg1: memref<128xi32, #tpu.memory_space<smem>>, %arg2: memref<128x128xf32, #tpu.memory_space<vmem>>, %arg3: memref<128x128xf32, #tpu.memory_space<vmem>>, %arg4: memref<1x128xf32, #tpu.memory_space<vmem>>, %arg5: memref<128x128xf32, #tpu.memory_space<vmem>>, %arg6: memref<1x128xf32, #tpu.memory_space<vmem>>, %arg7: memref<128x128xf32, #tpu.memory_space<vmem>>, %arg8: memref<128x128xf32, #tpu.memory_space<vmem>>) attributes {dimension_semantics = [#tpu.dimension_semantics<parallel>], iteration_bounds = array<i64: 1>, scalar_prefetch = 1 : i64, scratch_operands = 1 : i64, tpu.core_type = #tpu.core_type<tc>, window_params = [{pipeline_mode = #tpu.pipeline_mode<synchronous>, transform_indices = @transform_0, window_bounds = array<i64: 128, 128>}, {pipeline_mode = #tpu.pipeline_mode<synchronous>, transform_indices = @transform_1, window_bounds = array<i64: 128, 128>}, {pipeline_mode = #tpu.pipeline_mode<synchronous>, transform_indices = @transform_2, window_bounds = array<i64: 1, 128>}, {pipeline_mode = #tpu.pipeline_mode<synchronous>, transform_indices = @transform_3, window_bounds = array<i64: 128, 128>}, {pipeline_mode = #tpu.pipeline_mode<synchronous>, transform_indices = @transform_4, window_bounds = array<i64: 1, 128>}, {transform_indices = @transform_5, window_bounds = array<i64: 128, 128>}]} {
    %c128_i32 = arith.constant 128 : i32
    %0 = arith.muli %arg0, %c128_i32 : i32
    %c0_i32 = arith.constant 0 : i32
    %c128_i32_0 = arith.constant 128 : i32
    %1 = arith.addi %c0_i32, %c128_i32_0 : i32
    %c1_i32 = arith.constant 1 : i32
    scf.for %arg9 = %c0_i32 to %1 step %c1_i32  : i32 {
      %26 = arith.addi %0, %arg9 : i32
      %27 = arith.index_cast %26 : i32 to index
      %28 = memref.load %arg1[%27] : memref<128xi32, #tpu.memory_space<smem>>
      %29 = arith.index_cast %28 : i32 to index
      %c0_17 = arith.constant 0 : index
      %30 = vector.load %arg2[%29, %c0_17] : memref<128x128xf32, #tpu.memory_space<vmem>>, vector<1x128xf32>
      %31 = arith.index_cast %arg9 : i32 to index
      %c0_18 = arith.constant 0 : index
      %32 = vector.load %arg8[%31, %c0_18] : memref<128x128xf32, #tpu.memory_space<vmem>>, vector<1x128xf32>
      tpu.vector_store %arg8[%31, %c0_18], %30 {strides = array<i32>} : memref<128x128xf32, #tpu.memory_space<vmem>>, vector<1x128xf32>,
    }
    %c128_i32_1 = arith.constant 128 : i32
    %c0 = arith.constant 0 : index
    %c0_2 = arith.constant 0 : index
    %2 = vector.load %arg8[%c0, %c0_2] : memref<128x128xf32, #tpu.memory_space<vmem>>, vector<128x128xf32>
    %c0_3 = arith.constant 0 : index
    %c0_4 = arith.constant 0 : index
    %3 = vector.load %arg3[%c0_3, %c0_4] : memref<128x128xf32, #tpu.memory_space<vmem>>, vector<128x128xf32>
    %c0_5 = arith.constant 0 : index
    %c0_6 = arith.constant 0 : index
    %4 = vector.load %arg5[%c0_5, %c0_6] : memref<128x128xf32, #tpu.memory_space<vmem>>, vector<128x128xf32>
    %c0_7 = arith.constant 0 : index
    %c0_8 = arith.constant 0 : index
    %5 = vector.load %arg4[%c0_7, %c0_8] : memref<1x128xf32, #tpu.memory_space<vmem>>, vector<1x128xf32>
    %c0_9 = arith.constant 0 : index
    %c0_10 = arith.constant 0 : index
    %6 = vector.load %arg6[%c0_9, %c0_10] : memref<1x128xf32, #tpu.memory_space<vmem>>, vector<1x128xf32>
    %cst = arith.constant dense<0.000000e+00> : vector<128x128xf32>
    %7 = tpu.matmul %2, %3, %cst {dimension_numbers = #tpu.dot_dimension_numbers<[1], [0], [0], [1], [0, 0, 1, 1], [], []>} : vector<128x128xf32>, vector<128x128xf32>, vector<128x128xf32> -> vector<128x128xf32>
    %8 = vector.broadcast %5 : vector<1x128xf32> to vector<128x128xf32>
    %9 = arith.addf %7, %8 : vector<128x128xf32>
    %cst_11 = arith.constant 0.000000e+00 : f32
    %10 = vector.broadcast %cst_11 : f32 to vector<128x128xf32>
    %11 = arith.maximumf %9, %10 : vector<128x128xf32>
    %cst_12 = arith.constant dense<0.000000e+00> : vector<128x128xf32>
    %12 = tpu.matmul %11, %4, %cst_12 {dimension_numbers = #tpu.dot_dimension_numbers<[1], [0], [0], [1], [0, 0, 1, 1], [], []>} : vector<128x128xf32>, vector<128x128xf32>, vector<128x128xf32> -> vector<128x128xf32>
    %13 = vector.broadcast %6 : vector<1x128xf32> to vector<128x128xf32>
    %14 = arith.addf %12, %13 : vector<128x128xf32>
    %cst_13 = arith.constant dense<0xFF800000> : vector<128xf32>
    %15 = vector.multi_reduction <maximumf>, %14, %cst_13 [1] : vector<128x128xf32> to vector<128xf32>
    %16 = vector.shape_cast %15 : vector<128xf32> to vector<128x1xf32>
    %17 = vector.broadcast %16 : vector<128x1xf32> to vector<128x128xf32>
    %18 = arith.subf %14, %17 : vector<128x128xf32>
    %19 = math.exp %18 : vector<128x128xf32>
    %cst_14 = arith.constant dense<0.000000e+00> : vector<128xf32>
    %20 = vector.multi_reduction <add>, %19, %cst_14 [1] : vector<128x128xf32> to vector<128xf32>
    %21 = vector.shape_cast %20 : vector<128xf32> to vector<128x1xf32>
    %22 = tpu.reciprocal %21 {approx = true} : vector<128x1xf32> -> vector<128x1xf32>
    %23 = vector.broadcast %22 : vector<128x1xf32> to vector<128x128xf32>
    %24 = arith.mulf %19, %23 : vector<128x128xf32>
    %c0_15 = arith.constant 0 : index
    %c0_16 = arith.constant 0 : index
    %25 = vector.load %arg7[%c0_15, %c0_16] : memref<128x128xf32, #tpu.memory_space<vmem>>, vector<128x128xf32>
    tpu.vector_store %arg7[%c0_15, %c0_16], %24 {strides = array<i32>} : memref<128x128xf32, #tpu.memory_space<vmem>>, vector<128x128xf32>,
    return
  }
  func.func @transform_0(%arg0: i32, %arg1: memref<128xi32, #tpu.memory_space<smem>>) -> (i32, i32) {
    %c0_i32 = arith.constant 0 : i32
    %c0_i32_0 = arith.constant 0 : i32
    %c0_i32_1 = arith.constant 0 : i32
    return %c0_i32, %c0_i32_0 : i32, i32
  }
  func.func @transform_1(%arg0: i32, %arg1: memref<128xi32, #tpu.memory_space<smem>>) -> (i32, i32) {
    %c0_i32 = arith.constant 0 : i32
    %c0_i32_0 = arith.constant 0 : i32
    %c0_i32_1 = arith.constant 0 : i32
    return %c0_i32, %c0_i32_0 : i32, i32
  }
  func.func @transform_2(%arg0: i32, %arg1: memref<128xi32, #tpu.memory_space<smem>>) -> (i32, i32) {
    %c0_i32 = arith.constant 0 : i32
    %c0_i32_0 = arith.constant 0 : i32
    %c0_i32_1 = arith.constant 0 : i32
    return %c0_i32, %c0_i32_0 : i32, i32
  }
  func.func @transform_3(%arg0: i32, %arg1: memref<128xi32, #tpu.memory_space<smem>>) -> (i32, i32) {
    %c0_i32 = arith.constant 0 : i32
    %c0_i32_0 = arith.constant 0 : i32
    %c0_i32_1 = arith.constant 0 : i32
    return %c0_i32, %c0_i32_0 : i32, i32
  }
  func.func @transform_4(%arg0: i32, %arg1: memref<128xi32, #tpu.memory_space<smem>>) -> (i32, i32) {
    %c0_i32 = arith.constant 0 : i32
    %c0_i32_0 = arith.constant 0 : i32
    %c0_i32_1 = arith.constant 0 : i32
    return %c0_i32, %c0_i32_0 : i32, i32
  }
  func.func @transform_5(%arg0: i32, %arg1: memref<128xi32, #tpu.memory_space<smem>>) -> (i32, i32) {
    %c0_i32 = arith.constant 0 : i32
    %c0_i32_0 = arith.constant 0 : i32
    return %arg0, %c0_i32 : i32, i32
  }
}

</mosaic_0001>

<bundles_post_ra>
// kernel: tpu_custom_call.1
= control target key start
LH: loop header
LB: loop body
LE: loop exit
PB: predicated region body
PF: predicated region fallthrough
CT: control target
= control target key end

     0   :  { %s1291_s0 = inlined_call_operand.hbm [shape: s32[128], index: 0, kind: input, shape index: {}]   ;;  %s1292_s1 = inlined_call_operand.hbm [shape: f32[128,128], index: 1, kind: input, shape index: {}]   ;;  %s1293_s2 = inlined_call_operand.hbm [shape: f32[128,128], index: 2, kind: input, shape index: {}]   ;;  %s1294_s3 = inlined_call_operand.vmem [shape: f32[1,128], index: 3, kind: input, shape index: {}]   ;;  %s1295_s4 = inlined_call_operand.hbm [shape: f32[128,128], index: 4, kind: input, shape index: {}]   ;;  %s1296_s5 = inlined_call_operand.vmem [shape: f32[1,128], index: 5, kind: input, shape index: {}]   ;;  %s1297_s6 = inlined_call_operand.hbm [shape: f32[128,128], index: 6, kind: output, shape index: {}]  }
   0x1   :  { %s954_s23 = scalar_lea.hbm %s1291_s0, 16 }
   0x2   :  { %p955_p0 = scmp.ne.s32.totalorder %s1291_s0, %s954_s23  ;;  %p958_p1 = scmp.lt.u32.totalorder %s954_s23, %s1291_s0 }
   0x4   :  { %p960_p2 = pnand %p958_p1, %p955_p0 }
   0x6   :  { %963 = shalt.err (!%p960_p2)  }
   0x7   :  { %s1068_s28 = smov [#allocation4]  }
   0x8   :  { %12 = dma.hbm_to_smem %s1291_s0, 16, %s1068_s28, [#allocation3] }
   0x9   :  { %1056 = dma.done.wait [#allocation3], 16 }
   0xa   :  { %1057 = vsyncadd [#allocation3], 4294967280 }
   0xb   :  { %14 = sfence }
   0xc   :  { %15 = vsyncpa [#allocation6], 0 }
   0xd   :  { %16 = vsyncpa [#allocation9], 0 }
   0xe   :  { %17 = vsyncpa [#allocation7], 0  ;;  %s1069_s7 = smov [#allocation8]   ;;  %s1070_s9 = smov [#allocation5]  }
   0xf   :  { %s35_s8 = sshll.u32 %s1069_s7, 4  ;;  %s23_s10 = sshll.u32 %s1070_s9, 4  ;;  %s36_s8 = int_to_ptr.vmem [resolvable:$true] %s35_s8  ;;  %s1122_s10 = int_to_ptr.vmem [resolvable:$true] %s23_s10 }
  0x10   :  { %s964_s13 = scalar_lea.hbm %s1293_s2, 2048 }
  0x11   :  { %p965_p3 = scmp.ne.s32.totalorder %s1293_s2, %s964_s13  ;;  %p968_p4 = scmp.lt.u32.totalorder %s964_s13, %s1293_s2 }
  0x13   :  { %p970_p5 = pnand %p968_p4, %p965_p3 }
  0x15   :  { %973 = shalt.err (!%p970_p5)
}
  0x16   :  { %s974_s17 = scalar_lea.vmem %s36_s8, 2048  ;;  %p979_p7 = scmp.lt.s32.totalorder %s36_s8, %s36_s8 }
  0x17   :  { %p975_p6 = scmp.ne.s32.totalorder %s36_s8, %s974_s17  ;;  %p980_p8 = scmp.lt.s32.totalorder %s974_s17, %s974_s17 }
  0x19   :  { %p981_p9 = por %p980_p8, %p979_p7 }
  0x1b   :  { %p982_p10 = pnand %p981_p9, %p975_p6 }
  0x1d   :  { %985 = shalt.err (!%p982_p10)
}
  0x1e   :  { %s1071_s18 = smov 128   ;;  %s1072_s19 = smov 8  }
  0x1f   :  { %41 = dma.hbm_to_vmem [thread:$0]  %s1293_s2, 2048, %s36_s8, [#allocation9], %s1071_s18, %s1071_s18, %s1072_s19  }
  0x20   :  { %s986_s24 = scalar_lea.hbm %s1292_s1, 2048 }
  0x21   :  { %p987_p11 = scmp.ne.s32.totalorder %s1292_s1, %s986_s24  ;;  %p990_p12 = scmp.lt.u32.totalorder %s986_s24, %s1292_s1 }
  0x23   :  { %p992_p13 = pnand %p990_p12, %p987_p11 }
  0x25   :  { %995 = shalt.err (!%p992_p13)
}
  0x26   :  { %s996_s29 = scalar_lea.vmem %s1122_s10, 2048  ;;  %p1001_p1 = scmp.lt.s32.totalorder %s1122_s10, %s1122_s10 }
  0x27   :  { %p997_p0 = scmp.ne.s32.totalorder %s1122_s10, %s996_s29  ;;  %p1002_p2 = scmp.lt.s32.totalorder %s996_s29, %s996_s29 }
  0x29   :  { %p1003_p3 = por %p1002_p2, %p1001_p1 }
  0x2b   :  { %p1004_p4 = pnand %p1003_p3, %p997_p0 }
  0x2d   :  { %1007 = shalt.err (!%p1004_p4)
}
  0x2e   :  { %29 = dma.hbm_to_vmem [thread:$0]  %s1292_s1, 2048, %s1122_s10, [#allocation6], %s1071_s18, %s1071_s18, %s1072_s19  }
  0x2f   :  { %s1073_s7 = smov [#allocation10]   ;;  %s1008_s12 = scalar_lea.hbm %s1295_s4, 2048 }
  0x30   :  { %s49_s8 = sshll.u32 %s1073_s7, 4  ;;  %p1009_p5 = scmp.ne.s32.totalorder %s1295_s4, %s1008_s12  ;;  %s50_s8 = int_to_ptr.vmem [resolvable:$true] %s49_s8 }
  0x31   :  { %p1012_p6 = scmp.lt.u32.totalorder %s1008_s12, %s1295_s4 }
  0x33   :  { %p1014_p7 = pnand %p1012_p6, %p1009_p5 }
  0x35   :  { %1017 = shalt.err (!%p1014_p7)
}
  0x36   :  { %s1018_s16 = scalar_lea.vmem %s50_s8, 2048  ;;  %p1023_p9 = scmp.lt.s32.totalorder %s50_s8, %s50_s8 }
  0x37   :  { %p1019_p8 = scmp.ne.s32.totalorder %s50_s8, %s1018_s16  ;;  %p1024_p10 = scmp.lt.s32.totalorder %s1018_s16, %s1018_s16 }
  0x39   :  { %p1025_p11 = por %p1024_p10, %p1023_p9 }
  0x3b   :  { %p1026_p12 = pnand %p1025_p11, %p1019_p8 }
  0x3d   :  { %1029 = shalt.err (!%p1026_p12)
}
  0x3e   :  { %55 = dma.hbm_to_vmem [thread:$0]  %s1295_s4, 2048, %s50_s8, [#allocation9], %s1071_s18, %s1071_s18, %s1072_s19  }
  0x3f   :  { %1058 = dma.done.wait [#allocation6], 2048  }
  0x40   :  { %1059 = vsyncadd [#allocation6], 4294965248 }
  0x41   :  { %1060 = dma.done.wait [#allocation9], 4096  }
  0x42   :  { %1061 = vsyncadd [#allocation9], 4294963200  ;;  %s1064_s17 = smov 0  }
  0x43 LB: > { %s75_s20 = sld [smem:[#allocation4 + %s1066_s17]]  ;;  %s78_s22 = scalar_lea.vmem [#allocation2], %s1066_s17  ;;  %s1066_s17 = sphi %s1064_s17, %s73_s17  }
  0x44   : > { %s73_s17 = sadd.s32 1, %s1066_s17  }
  0x45   : > { %p70_p13 = scmp.ge.s32.totalorder %s73_s17, 128  }
  0x46   :  { %v96_v1 = vld [vmem:[#allocation8] sm:$0xff] (%p70_p13)  ;;  %v97_v2 = vld [vmem:[#allocation8 + $0x8] sm:$0xff] (%p70_p13)  ;;  %v98_v3 = vld [vmem:[#allocation8 + $0x10] sm:$0xff] (%p70_p13) }
  0x47   :  { %72 = sbr.rel (!%p70_p13) target bundleno = 67 (0x43), region = 61  ;;  %v811_v4 = vpack.c.bf16 (%p70_p13), %v97_v2, %v96_v1  ;;  %v99_v5 = vld [vmem:[#allocation8 + $0x18] sm:$0xff] (%p70_p13)  ;;  %v100_v7 = vld [vmem:[#allocation8 + $0x20] sm:$0xff] (%p70_p13)  ;;  %v101_v8 = vld [vmem:[#allocation8 + $0x28] sm:$0xff] (%p70_p13) }
  0x48   :  { %v815_v6 = vpack.c.bf16 (%p70_p13), %v99_v5, %v98_v3  ;;  %v819_v9 = vpack.c.bf16 (%p70_p13), %v101_v8, %v100_v7  ;;  %v102_v11 = vld [vmem:[#allocation8 + $0x30] sm:$0xff] (%p70_p13)  ;;  %v103_v12 = vld [vmem:[#allocation8 + $0x38] sm:$0xff] (%p70_p13)  ;;  %v104_v14 = vld [vmem:[#allocation8 + $0x40] sm:$0xff] (%p70_p13) }
  0x49   : > { %s76_s21 = scalar_lea.vmem [#allocation5], %s75_s20  ;;  %812 = vmatprep.subr.bf16.mxu0 (%p70_p13), %v811_v4  ;;  %v823_v13 = vpack.c.bf16 (%p70_p13), %v103_v12, %v102_v11  ;;  %v105_v15 = vld [vmem:[#allocation8 + $0x48] sm:$0xff] (%p70_p13)  ;;  %v112_v16 = vld [vmem:[#allocation10] sm:$0xff] (%p70_p13)  ;;  %v114_v18 = vld [vmem:[#allocation10 + $0x10] sm:$0xff] (%p70_p13) }
  0x4a   : > { %v77_v0 = vld [vmem:[%s76_s21] sm:$0x1]  ;;  %814 = vmatpush3.bf16.msra.mxu0 (%p70_p13), %v811_v4  ;;  %v113_v17 = vld [vmem:[#allocation10 + $0x8] sm:$0xff] (%p70_p13)  ;;  %v115_v19 = vld [vmem:[#allocation10 + $0x18] sm:$0xff] (%p70_p13)  ;;  %v827_v22 = vpack.c.bf16 (%p70_p13), %v105_v15, %v104_v14 }
  0x4b   : > { %79 = vst [vmem:[%s78_s22] sm:$0x1] %v77_v0  ;;  %816 = vmatprep.subr.bf16.mxu0 (%p70_p13), %v815_v6  ;;  %v843_v20 = vpack.c.bf16 (%p70_p13), %v113_v17, %v112_v16  ;;  %v847_v21 = vpack.c.bf16 (%p70_p13), %v115_v19, %v114_v18  ;;  %v116_v23 = vld [vmem:[#allocation10 + $0x20] sm:$0xff] (%p70_p13)  ;;  %v117_v24 = vld [vmem:[#allocation10 + $0x28] sm:$0xff] (%p70_p13)  ;;  %v106_v25 = vld [vmem:[#allocation8 + $0x50] sm:$0xff] (%p70_p13) }
  0x4c   :  { %v107_v26 = vld [vmem:[#allocation8 + $0x58] sm:$0xff] (%p70_p13)  ;;  %v851_v27 = vpack.c.bf16 (%p70_p13), %v117_v24, %v116_v23  ;;  %v118_v29 = vld [vmem:[#allocation10 + $0x30] sm:$0xff] (%p70_p13)  ;;  %v108_v31 = vld [vmem:[#allocation8 + $0x60] sm:$0xff] (%p70_p13) }
  0x4d   :  { %844 = vmatprep.subr.bf16.mxu1 (%p70_p13), %v843_v20  ;;  %v831_v28 = vpack.c.bf16 (%p70_p13), %v107_v26, %v106_v25  ;;  %v119_v30 = vld [vmem:[#allocation10 + $0x38] sm:$0xff] (%p70_p13)  ;;  %v109_v32 = vld [vmem:[#allocation8 + $0x68] sm:$0xff] (%p70_p13)  ;;  %v120_v35 = vld [vmem:[#allocation10 + $0x40] sm:$0xff] (%p70_p13) }
  0x4e   :  { %818 = vmatpush3.bf16.msra.mxu0 %v815_v6  ;;  %846 = vmatpush3.bf16.msra.mxu1 %v843_v20  ;;  %v855_v33 = vpack.c.bf16 %v119_v30, %v118_v29  ;;  %v835_v34 = vpack.c.bf16 %v109_v32, %v108_v31  ;;  %v121_v36 = vld [vmem:[#allocation10 + $0x48] sm:$0xff]  ;;  %v110_v37 = vld [vmem:[#allocation8 + $0x70] sm:$0xff]  ;;  %v111_v38 = vld [vmem:[#allocation8 + $0x78] sm:$0xff] }
  0x4f   :  { %820 = vmatprep.subr.bf16.mxu0 %v819_v9  ;;  %848 = vmatprep.subr.bf16.mxu1 %v847_v21  ;;  %v859_v39 = vpack.c.bf16 %v121_v36, %v120_v35  ;;  %v839_v40 = vpack.c.bf16 %v111_v38, %v110_v37  ;;  %v122_v41 = vld [vmem:[#allocation10 + $0x50] sm:$0xff]  ;;  %v123_v42 = vld [vmem:[#allocation10 + $0x58] sm:$0xff]  ;;  %v124_v44 = vld [vmem:[#allocation10 + $0x60] sm:$0xff] }
  0x50   :  { %v863_v43 = vpack.c.bf16 %v123_v42, %v122_v41  ;;  %v125_v45 = vld [vmem:[#allocation10 + $0x68] sm:$0xff]  ;;  %v126_v62 = vld [vmem:[#allocation10 + $0x70] sm:$0xff]  ;;  %v127_v63 = vld [vmem:[#allocation10 + $0x78] sm:$0xff] }
  0x51   :  { %v867_v47 = vpack.c.bf16 %v125_v45, %v124_v44  ;;  %v871_v0 = vpack.c.bf16 %v127_v63, %v126_v62  ;;  %v633_v1 = vld [vmem:[%s1294_s3] ss:$0 sm:$0xff] }
  0x52   :  { %v80_v10 = vld [vmem:[#allocation2] sm:$0xff]  ;;  %822 = vmatpush3.bf16.msra.mxu0 %v819_v9  ;;  %850 = vmatpush3.bf16.msra.mxu1 %v847_v21  ;;  %v81_v46 = vld [vmem:[#allocation2 + $0x8] sm:$0xff]  ;;  %v82_v48 = vld [vmem:[#allocation2 + $0x10] sm:$0xff] }
  0x53   :  { %731 = vmatprep.mubr.f32.mxu0 %v80_v10  ;;  %824 = vmatprep.subr.bf16.mxu0 %v823_v13  ;;  %v83_v49 = vld [vmem:[#allocation2 + $0x18] sm:$0xff]  ;;  %v84_v50 = vld [vmem:[#allocation2 + $0x20] sm:$0xff]  ;;  %v85_v51 = vld [vmem:[#allocation2 + $0x28] sm:$0xff] }
  0x54   :  { %852 = vmatprep.subr.bf16.mxu1 %v851_v27  ;;  %v86_v52 = vld [vmem:[#allocation2 + $0x30] sm:$0xff]  ;;  %v87_v53 = vld [vmem:[#allocation2 + $0x38] sm:$0xff]  ;;  %v88_v54 = vld [vmem:[#allocation2 + $0x40] sm:$0xff] }
  0x55   :  { %v89_v55 = vld [vmem:[#allocation2 + $0x48] sm:$0xff]  ;;  %v90_v56 = vld [vmem:[#allocation2 + $0x50] sm:$0xff]  ;;  %v91_v57 = vld [vmem:[#allocation2 + $0x58] sm:$0xff] }
  0x56   :  { %826 = vmatpush3.bf16.msra.mxu0 %v823_v13  ;;  %854 = vmatpush3.bf16.msra.mxu1 %v851_v27  ;;  %v92_v58 = vld [vmem:[#allocation2 + $0x60] sm:$0xff]  ;;  %v93_v59 = vld [vmem:[#allocation2 + $0x68] sm:$0xff]  ;;  %v94_v60 = vld [vmem:[#allocation2 + $0x70] sm:$0xff] }
  0x57   :  { %828 = vmatprep.subr.bf16.mxu0 %v827_v22  ;;  %856 = vmatprep.subr.bf16.mxu1 %v855_v33  ;;  %v95_v61 = vld [vmem:[#allocation2 + $0x78] sm:$0xff] }
  0x5a   :  { %830 = vmatpush3.bf16.msra.mxu0 %v827_v22  ;;  %858 = vmatpush3.bf16.msra.mxu1 %v855_v33 }
  0x5b   :  { %832 = vmatprep.subr.bf16.mxu0 %v831_v28  ;;  %860 = vmatprep.subr.bf16.mxu1 %v859_v39 }
  0x5e   :  { %834 = vmatpush3.bf16.msra.mxu0 %v831_v28  ;;  %862 = vmatpush3.bf16.msra.mxu1 %v859_v39 }
  0x5f   :  { %836 = vmatprep.subr.bf16.mxu0 %v835_v34  ;;  %864 = vmatprep.subr.bf16.mxu1 %v863_v43 }
  0x62   :  { %838 = vmatpush3.bf16.msra.mxu0 %v835_v34  ;;  %866 = vmatpush3.bf16.msra.mxu1 %v863_v43 }
  0x63   :  { %840 = vmatprep.subr.bf16.mxu0 %v839_v40  ;;  %868 = vmatprep.subr.bf16.mxu1 %v867_v47 }
  0x66   :  { %842 = vmatpush3.bf16.msra.mxu0 %v839_v40  ;;  %870 = vmatpush3.bf16.msra.mxu1 %v867_v47 }
  0x67   :  { %872 = vmatprep.subr.bf16.mxu1 %v871_v0 }
  0x69   :  { %732 = vmatmul.mubr.f32.vlgmr.msra.gmra.mrb[0].mxu0 %v81_v46 }
  0x6a   :  { %734 = vmatprep.mubr.f32.mxu0 %v82_v48  ;;  %874 = vmatpush3.bf16.msra.mxu1 %v871_v0 }
  0x6d   :  { %735 = vmatmul.mubr.f32.gmra.mrb[2].mxu0 %v83_v49 }
  0x6e   :  { %737 = vmatprep.mubr.f32.mxu0 %v84_v50  ;;  %v634_v50 = vld [vmem:[%s1296_s5] ss:$0 sm:$0xff]  ;;  %s1074_s5 = smov [#allocation11]  }
  0x6f   :  { %s613_s25 = sshll.u32 %s1074_s5, 4  ;;  %s614_s25 = int_to_ptr.vmem [resolvable:$true] %s613_s25 }
  0x70   :  { %s1030_s26 = scalar_lea.vmem %s614_s25, 2048  ;;  %p1035_p1 = scmp.lt.s32.totalorder %s614_s25, %s614_s25 }
  0x71   :  { %738 = vmatmul.mubr.f32.gmra.mrb[4].mxu0 %v85_v51  ;;  %p1031_p0 = scmp.ne.s32.totalorder %s614_s25, %s1030_s26  ;;  %p1036_p2 = scmp.lt.s32.totalorder %s1030_s26, %s1030_s26 }
  0x72   :  { %740 = vmatprep.mubr.f32.mxu0 %v86_v52 }
  0x73   :  { %p1037_p3 = por %p1036_p2, %p1035_p1 }
  0x75   :  { %741 = vmatmul.mubr.f32.gmra.mrb[6].mxu0 %v87_v53  ;;  %p1038_p4 = pnand %p1037_p3, %p1031_p0 }
  0x76   :  { %743 = vmatprep.mubr.f32.mxu0 %v88_v54 }
  0x79   :  { %744 = vmatmul.mubr.f32.gmra.mrb[8].mxu0 %v89_v55 }
  0x7a   :  { %746 = vmatprep.mubr.f32.mxu0 %v90_v56 }
  0x7d   :  { %747 = vmatmul.mubr.f32.gmra.mrb[10].mxu0 %v91_v57 }
  0x7e   :  { %749 = vmatprep.mubr.f32.mxu0 %v92_v58 }
  0x81   :  { %750 = vmatmul.mubr.f32.gmra.mrb[12].mxu0 %v93_v59 }
  0x82   :  { %752 = vmatprep.mubr.f32.mxu0 %v94_v60 }
  0x85   :  { %753 = vmatmul.mubr.f32.gmra.mrb[14].mxu0 %v95_v61 }
 0x13c   :  { %v733_v2 = vpop.f32.mrb[0].mxu0 }
 0x13d   :  { %v208_v3 = vadd.f32 %v733_v2, %v633_v1  ;;  %v202_v4 = vpop.f32.mrb[1].mxu0 }
 0x13e   :  { %v203_v5 = vadd.f32 %v633_v1, %v202_v4 }
 0x13f   :  { %v282_v8 = vmax.f32 %v208_v3, 0.0 }
 0x140   :  { %v736_v6 = vpop.f32.mrb[2].mxu0  ;;  %v281_v7 = vmax.f32 %v203_v5, 0.0 }
 0x141   :  { %v218_v9 = vadd.f32 %v736_v6, %v633_v1  ;;  %v212_v10 = vpop.f32.mrb[3].mxu0 }
 0x142   :  { %v213_v11 = vadd.f32 %v633_v1, %v212_v10  ;;  %787 = vmatprep.mubr.f32.mxu1 %v281_v7 }
 0x143   :  { %788 = vmatmul.mubr.f32.vlgmr.msra.gmra.mrb[0].mxu1 %v282_v8  ;;  %v284_v14 = vmax.f32 %v218_v9, 0.0 }
 0x144   :  { %v283_v12 = vmax.f32 %v213_v11, 0.0  ;;  %v739_v13 = vpop.f32.mrb[4].mxu0 }
 0x145   :  { %v228_v15 = vadd.f32 %v739_v13, %v633_v1  ;;  %v222_v16 = vpop.f32.mrb[5].mxu0 }
 0x146   :  { %v223_v17 = vadd.f32 %v633_v1, %v222_v16  ;;  %790 = vmatprep.mubr.f32.mxu1 %v283_v12 }
 0x147   :  { %v286_v18 = vmax.f32 %v228_v15, 0.0  ;;  %791 = vmatmul.mubr.f32.gmra.mrb[2].mxu1 %v284_v14 }
 0x148   :  { %v285_v19 = vmax.f32 %v223_v17, 0.0  ;;  %v742_v20 = vpop.f32.mrb[6].mxu0 }
 0x149   :  { %v238_v21 = vadd.f32 %v742_v20, %v633_v1  ;;  %v232_v22 = vpop.f32.mrb[7].mxu0 }
 0x14a   :  { %v233_v23 = vadd.f32 %v633_v1, %v232_v22  ;;  %793 = vmatprep.mubr.f32.mxu1 %v285_v19 }
 0x14b   :  { %v288_v24 = vmax.f32 %v238_v21, 0.0  ;;  %794 = vmatmul.mubr.f32.gmra.mrb[4].mxu1 %v286_v18 }
 0x14c   :  { %v287_v25 = vmax.f32 %v233_v23, 0.0  ;;  %v745_v26 = vpop.f32.mrb[8].mxu0 }
 0x14d   :  { %v248_v27 = vadd.f32 %v745_v26, %v633_v1  ;;  %v242_v28 = vpop.f32.mrb[9].mxu0 }
 0x14e   :  { %v243_v29 = vadd.f32 %v633_v1, %v242_v28  ;;  %796 = vmatprep.mubr.f32.mxu1 %v287_v25 }
 0x14f   :  { %v290_v30 = vmax.f32 %v248_v27, 0.0  ;;  %797 = vmatmul.mubr.f32.gmra.mrb[6].mxu1 %v288_v24 }
 0x150   :  { %v289_v31 = vmax.f32 %v243_v29, 0.0  ;;  %v748_v32 = vpop.f32.mrb[10].mxu0 }
 0x151   :  { %v258_v33 = vadd.f32 %v748_v32, %v633_v1  ;;  %v252_v34 = vpop.f32.mrb[11].mxu0 }
 0x152   :  { %v253_v35 = vadd.f32 %v633_v1, %v252_v34  ;;  %799 = vmatprep.mubr.f32.mxu1 %v289_v31 }
 0x153   :  { %v292_v36 = vmax.f32 %v258_v33, 0.0  ;;  %800 = vmatmul.mubr.f32.gmra.mrb[8].mxu1 %v290_v30 }
 0x154   :  { %v291_v37 = vmax.f32 %v253_v35, 0.0  ;;  %v751_v38 = vpop.f32.mrb[12].mxu0 }
 0x155   :  { %v268_v39 = vadd.f32 %v751_v38, %v633_v1  ;;  %v262_v40 = vpop.f32.mrb[13].mxu0 }
 0x156   :  { %v263_v41 = vadd.f32 %v633_v1, %v262_v40  ;;  %802 = vmatprep.mubr.f32.mxu1 %v291_v37 }
 0x157   :  { %v294_v42 = vmax.f32 %v268_v39, 0.0  ;;  %803 = vmatmul.mubr.f32.gmra.mrb[10].mxu1 %v292_v36 }
 0x158   :  { %v293_v43 = vmax.f32 %v263_v41, 0.0  ;;  %v754_v44 = vpop.f32.mrb[14].mxu0 }
 0x159   :  { %v278_v45 = vadd.f32 %v754_v44, %v633_v1  ;;  %v272_v46 = vpop.f32.mrb[15].mxu0 }
 0x15a   :  { %v273_v47 = vadd.f32 %v633_v1, %v272_v46  ;;  %805 = vmatprep.mubr.f32.mxu1 %v293_v43 }
 0x15b   :  { %v296_v48 = vmax.f32 %v278_v45, 0.0  ;;  %806 = vmatmul.mubr.f32.gmra.mrb[12].mxu1 %v294_v42 }
 0x15c   :  { %v295_v49 = vmax.f32 %v273_v47, 0.0 }
 0x15e   :  { %808 = vmatprep.mubr.f32.mxu1 %v295_v49 }
 0x15f   :  { %809 = vmatmul.mubr.f32.gmra.mrb[14].mxu1 %v296_v48 }
 0x216   :  { %v789_v51 = vpop.f32.mrb[0].mxu1 }
 0x217   :  { %v375_v52 = vadd.f32 %v789_v51, %v634_v50  ;;  %v369_v53 = vpop.f32.mrb[1].mxu1 }
 0x218   :  { %v370_v55 = vadd.f32 %v634_v50, %v369_v53 }
 0x219   :  { %450 = vmax.xlane.f32.xlu0 %v375_v52 }
 0x21a   :  { %v792_v54 = vpop.f32.mrb[2].mxu1 }
 0x21b   :  { %v385_v56 = vadd.f32 %v792_v54, %v634_v50  ;;  %v379_v57 = vpop.f32.mrb[3].mxu1 }
 0x21c   :  { %v380_v59 = vadd.f32 %v634_v50, %v379_v57 }
 0x21d   :  { %454 = vmax.xlane.f32.xlu1 %v385_v56  ;;  %448 = vmax.xlane.f32.xlu0 %v370_v55 }
 0x21e   :  { %v795_v58 = vpop.f32.mrb[4].mxu1 }
 0x21f   :  { %v389_v60 = vpop.f32.mrb[5].mxu1  ;;  %v395_v63 = vadd.f32 %v795_v58, %v634_v50 }
 0x220   :  { %v390_v61 = vadd.f32 %v634_v50, %v389_v60 }
 0x221   :  { %452 = vmax.xlane.f32.xlu1 %v380_v59 }
 0x222   :  { %v798_v62 = vpop.f32.mrb[6].mxu1  ;;  %456 = vmax.xlane.f32.xlu0 %v390_v61 }
 0x223   :  { %v399_v0 = vpop.f32.mrb[7].mxu1  ;;  %v405_v3 = vadd.f32 %v798_v62, %v634_v50 }
 0x224   :  { %v400_v1 = vadd.f32 %v634_v50, %v399_v0 }
 0x225   :  { %458 = vmax.xlane.f32.xlu1 %v395_v63 }
 0x226   :  { %v801_v2 = vpop.f32.mrb[8].mxu1  ;;  %460 = vmax.xlane.f32.xlu0 %v400_v1 }
 0x227   :  { %v409_v4 = vpop.f32.mrb[9].mxu1  ;;  %v1183_v7 = vadd.f32 %v801_v2, %v634_v50 }
 0x228   :  { %v1180_v5 = vadd.f32 %v634_v50, %v409_v4 }
 0x229   :  { %462 = vmax.xlane.f32.xlu1 %v405_v3 }
 0x22a   :  { %v804_v6 = vpop.f32.mrb[10].mxu1  ;;  %464 = vmax.xlane.f32.xlu0 %v1180_v5 }
 0x22b   :  { %v419_v8 = vpop.f32.mrb[11].mxu1  ;;  %v1189_v11 = vadd.f32 %v804_v6, %v634_v50 }
 0x22c   :  { %v1185_v9 = vadd.f32 %v634_v50, %v419_v8 }
 0x22d   :  { %466 = vmax.xlane.f32.xlu1 %v1183_v7 }
 0x22e   :  { %v807_v10 = vpop.f32.mrb[12].mxu1  ;;  %468 = vmax.xlane.f32.xlu0 %v1185_v9 }
 0x22f   :  { %v429_v12 = vpop.f32.mrb[13].mxu1  ;;  %v1195_v15 = vadd.f32 %v807_v10, %v634_v50 }
 0x230   :  { %v1191_v13 = vadd.f32 %v634_v50, %v429_v12 }
 0x231   :  { %470 = vmax.xlane.f32.xlu1 %v1189_v11 }
 0x232   :  { %v810_v14 = vpop.f32.mrb[14].mxu1  ;;  %472 = vmax.xlane.f32.xlu0 %v1191_v13 }
 0x233   :  { %v439_v16 = vpop.f32.mrb[15].mxu1  ;;  %v1201_v18 = vadd.f32 %v810_v14, %v634_v50 }
 0x234   :  { %v1197_v17 = vadd.f32 %v634_v50, %v439_v16 }
 0x235   :  { %474 = vmax.xlane.f32.xlu1 %v1195_v15 }
 0x236   :  { %476 = vmax.xlane.f32.xlu0 %v1197_v17 }
 0x239   :  { %478 = vmax.xlane.f32.xlu1 %v1201_v18 }
 0x2a6   :  { %v451_v19 = vpop.xlane.xlu0 %450 }
 0x2a7   :  { %v481_v20 = vsub.f32 %v375_v52, %v451_v19 }
 0x2a9   :  { %v498_v21 = vmul.f32 1.442695, %v481_v20 }
 0x2aa   :  { %v455_v22 = vpop.xlane.xlu1 %454  ;;  %v449_v23 = vpop.xlane.xlu0 %448 }
 0x2ab   :  { %890 = vpow2.f32 %v498_v21  ;;  %v483_v24 = vsub.f32 %v385_v56, %v455_v22  ;;  %v480_v25 = vsub.f32 %v370_v55, %v449_v23 }
 0x2ad   :  { %v502_v26 = vmul.f32 1.442695, %v483_v24  ;;  %v496_v27 = vmul.f32 1.442695, %v480_v25 }
 0x2ae   :  { %v453_v28 = vpop.xlane.xlu1 %452 }
 0x2af   :  { %892 = vpow2.f32 %v502_v26  ;;  %v482_v29 = vsub.f32 %v380_v59, %v453_v28  ;;  %v457_v30 = vpop.xlane.xlu0 %456 }
 0x2b0   :  { %894 = vpow2.f32 %v496_v27  ;;  %v484_v31 = vsub.f32 %v390_v61, %v457_v30 }
 0x2b1   :  { %v500_v32 = vmul.f32 1.442695, %v482_v29 }
 0x2b2   :  { %v459_v33 = vpop.xlane.xlu1 %458  ;;  %v504_v36 = vmul.f32 1.442695, %v484_v31 }
 0x2b3   :  { %896 = vpow2.f32 %v500_v32  ;;  %v485_v34 = vsub.f32 %v395_v63, %v459_v33  ;;  %v461_v35 = vpop.xlane.xlu0 %460 }
 0x2b4   :  { %v486_v37 = vsub.f32 %v400_v1, %v461_v35 }
 0x2b5   :  { %v1204_v38 = vpop.eup %890  ;;  %v506_v39 = vmul.f32 1.442695, %v485_v34 }
 0x2b6   :  { %530 = vadd.xlane.f32.xlu1 %v1204_v38  ;;  %v463_v40 = vpop.xlane.xlu1 %462  ;;  %v508_v43 = vmul.f32 1.442695, %v486_v37 }
 0x2b7   :  { %898 = vpow2.f32 %v506_v39  ;;  %v487_v41 = vsub.f32 %v405_v3, %v463_v40  ;;  %v465_v42 = vpop.xlane.xlu0 %464 }
 0x2b8   :  { %900 = vpow2.f32 %v504_v36  ;;  %v488_v44 = vsub.f32 %v1180_v5, %v465_v42 }
 0x2b9   :  { %v1208_v45 = vpop.eup %892  ;;  %v510_v46 = vmul.f32 1.442695, %v487_v41 }
 0x2ba   :  { %v1210_v47 = vpop.eup %894  ;;  %534 = vadd.xlane.f32.xlu1 %v1208_v45  ;;  %v467_v48 = vpop.xlane.xlu1 %466  ;;  %v512_v51 = vmul.f32 1.442695, %v488_v44 }
 0x2bb   :  { %902 = vpow2.f32 %v510_v46  ;;  %v489_v49 = vsub.f32 %v1183_v7, %v467_v48  ;;  %528 = vadd.xlane.f32.xlu0 %v1210_v47  ;;  %v469_v50 = vpop.xlane.xlu0 %468 }
 0x2bc   :  { %904 = vpow2.f32 %v508_v43  ;;  %v490_v52 = vsub.f32 %v1185_v9, %v469_v50 }
 0x2bd   :  { %v1216_v53 = vpop.eup %896  ;;  %v514_v54 = vmul.f32 1.442695, %v489_v49 }
 0x2be   :  { %v471_v55 = vpop.xlane.xlu1 %470  ;;  %v516_v58 = vmul.f32 1.442695, %v490_v52 }
 0x2bf   :  { %906 = vpow2.f32 %v514_v54  ;;  %v491_v56 = vsub.f32 %v1189_v11, %v471_v55  ;;  %532 = vadd.xlane.f32.xlu0 %v1216_v53  ;;  %v473_v57 = vpop.xlane.xlu0 %472 }
 0x2c0   :  { %908 = vpow2.f32 %v512_v51  ;;  %v492_v59 = vsub.f32 %v1191_v13, %v473_v57 }
 0x2c1   :  { %v1221_v60 = vpop.eup %898  ;;  %v518_v61 = vmul.f32 1.442695, %v491_v56 }
 0x2c2   :  { %v1223_v62 = vpop.eup %900  ;;  %538 = vadd.xlane.f32.xlu1 %v1221_v60  ;;  %v475_v63 = vpop.xlane.xlu1 %474  ;;  %v520_v2 = vmul.f32 1.442695, %v492_v59 }
 0x2c3   :  { %910 = vpow2.f32 %v518_v61  ;;  %v493_v0 = vsub.f32 %v1195_v15, %v475_v63  ;;  %536 = vadd.xlane.f32.xlu0 %v1223_v62  ;;  %v477_v1 = vpop.xlane.xlu0 %476 }
 0x2c4   :  { %912 = vpow2.f32 %v516_v58  ;;  %v494_v3 = vsub.f32 %v1197_v17, %v477_v1 }
 0x2c5   :  { %v1229_v4 = vpop.eup %902  ;;  %v522_v5 = vmul.f32 1.442695, %v493_v0 }
 0x2c6   :  { %v1231_v6 = vpop.eup %904  ;;  %542 = vadd.xlane.f32.xlu1 %v1229_v4  ;;  %v479_v7 = vpop.xlane.xlu1 %478  ;;  %v524_v9 = vmul.f32 1.442695, %v494_v3 }
 0x2c7   :  { %914 = vpow2.f32 %v522_v5  ;;  %v495_v8 = vsub.f32 %v1201_v18, %v479_v7  ;;  %540 = vadd.xlane.f32.xlu0 %v1231_v6 }
 0x2c8   :  { %916 = vpow2.f32 %v520_v2 }
 0x2c9   :  { %v1236_v10 = vpop.eup %906  ;;  %v526_v11 = vmul.f32 1.442695, %v495_v8 }
 0x2ca   :  { %v1238_v12 = vpop.eup %908  ;;  %546 = vadd.xlane.f32.xlu1 %v1236_v10 }
 0x2cb   :  { %918 = vpow2.f32 %v526_v11  ;;  %544 = vadd.xlane.f32.xlu0 %v1238_v12 }
 0x2cc   :  { %920 = vpow2.f32 %v524_v9 }
 0x2cd   :  { %v1242_v13 = vpop.eup %910 }
 0x2ce   :  { %v1244_v14 = vpop.eup %912  ;;  %550 = vadd.xlane.f32.xlu1 %v1242_v13 }
 0x2cf   :  { %548 = vadd.xlane.f32.xlu0 %v1244_v14 }
 0x2d1   :  { %v1248_v15 = vpop.eup %914 }
 0x2d2   :  { %v1250_v16 = vpop.eup %916  ;;  %554 = vadd.xlane.f32.xlu1 %v1248_v15 }
 0x2d3   :  { %552 = vadd.xlane.f32.xlu0 %v1250_v16 }
 0x2d5   :  { %v1254_v17 = vpop.eup %918 }
 0x2d6   :  { %v1256_v18 = vpop.eup %920  ;;  %558 = vadd.xlane.f32.xlu1 %v1254_v17 }
 0x2d7   :  { %556 = vadd.xlane.f32.xlu0 %v1256_v18 }
 0x343   :  { %v531_v19 = vpop.xlane.xlu1 %530 }
 0x344   :  { %922 = vrcp.f32 %v531_v19 }
 0x347   :  { %v535_v20 = vpop.xlane.xlu1 %534 }
 0x348   :  { %924 = vrcp.f32 %v535_v20  ;;  %v529_v21 = vpop.xlane.xlu0 %528 }
 0x349   :  { %926 = vrcp.f32 %v529_v21 }
 0x34c   :  { %v533_v22 = vpop.xlane.xlu0 %532 }
 0x34d   :  { %928 = vrcp.f32 %v533_v22 }
 0x34e   :  { %v923_v23 = vpop.eup %922 }
 0x34f   :  { %v577_v24 = vmul.f32 %v923_v23, %v1204_v38  ;;  %v539_v25 = vpop.xlane.xlu1 %538 }
 0x350   :  { %930 = vrcp.f32 %v539_v25  ;;  %v537_v26 = vpop.xlane.xlu0 %536 }
 0x351   :  { %593 = vst [vmem:[#allocation11 + $0x8] sm:$0xff] %v577_v24  ;;  %932 = vrcp.f32 %v537_v26 }
 0x352   :  { %v925_v27 = vpop.eup %924 }
 0x353   :  { %v927_v28 = vpop.eup %926  ;;  %v579_v29 = vmul.f32 %v925_v27, %v1208_v45  ;;  %v543_v30 = vpop.xlane.xlu1 %542 }
 0x354   :  { %v576_v31 = vmul.f32 %v927_v28, %v1210_v47  ;;  %934 = vrcp.f32 %v543_v30  ;;  %v541_v32 = vpop.xlane.xlu0 %540 }
 0x355   :  { %595 = vst [vmem:[#allocation11 + $0x18] sm:$0xff] %v579_v29  ;;  %936 = vrcp.f32 %v541_v32 }
 0x356   :  { %592 = vst [vmem:[#allocation11] sm:$0xff] %v576_v31 }
 0x357   :  { %v929_v33 = vpop.eup %928  ;;  %v547_v34 = vpop.xlane.xlu1 %546 }
 0x358   :  { %v578_v35 = vmul.f32 %v929_v33, %v1216_v53  ;;  %938 = vrcp.f32 %v547_v34  ;;  %v545_v36 = vpop.xlane.xlu0 %544 }
 0x359   :  { %940 = vrcp.f32 %v545_v36 }
 0x35a   :  { %v931_v37 = vpop.eup %930  ;;  %594 = vst [vmem:[#allocation11 + $0x10] sm:$0xff] %v578_v35 }
 0x35b   :  { %v933_v38 = vpop.eup %932  ;;  %v581_v39 = vmul.f32 %v931_v37, %v1221_v60  ;;  %v551_v40 = vpop.xlane.xlu1 %550 }
 0x35c   :  { %v580_v41 = vmul.f32 %v933_v38, %v1223_v62  ;;  %942 = vrcp.f32 %v551_v40  ;;  %v549_v42 = vpop.xlane.xlu0 %548 }
 0x35d   :  { %597 = vst [vmem:[#allocation11 + $0x28] sm:$0xff] %v581_v39  ;;  %944 = vrcp.f32 %v549_v42 }
 0x35e   :  { %v935_v43 = vpop.eup %934  ;;  %596 = vst [vmem:[#allocation11 + $0x20] sm:$0xff] %v580_v41 }
 0x35f   :  { %v937_v44 = vpop.eup %936  ;;  %v583_v45 = vmul.f32 %v935_v43, %v1229_v4  ;;  %v555_v46 = vpop.xlane.xlu1 %554 }
 0x360   :  { %v582_v47 = vmul.f32 %v937_v44, %v1231_v6  ;;  %946 = vrcp.f32 %v555_v46  ;;  %v553_v48 = vpop.xlane.xlu0 %552 }
 0x361   :  { %599 = vst [vmem:[#allocation11 + $0x38] sm:$0xff] %v583_v45  ;;  %948 = vrcp.f32 %v553_v48 }
 0x362   :  { %v939_v49 = vpop.eup %938  ;;  %598 = vst [vmem:[#allocation11 + $0x30] sm:$0xff] %v582_v47 }
 0x363   :  { %v941_v50 = vpop.eup %940  ;;  %v585_v51 = vmul.f32 %v939_v49, %v1236_v10  ;;  %v559_v52 = vpop.xlane.xlu1 %558 }
 0x364   :  { %v584_v53 = vmul.f32 %v941_v50, %v1238_v12  ;;  %950 = vrcp.f32 %v559_v52  ;;  %v557_v54 = vpop.xlane.xlu0 %556 }
 0x365   :  { %601 = vst [vmem:[#allocation11 + $0x48] sm:$0xff] %v585_v51  ;;  %952 = vrcp.f32 %v557_v54 }
 0x366   :  { %v943_v55 = vpop.eup %942  ;;  %600 = vst [vmem:[#allocation11 + $0x40] sm:$0xff] %v584_v53 }
 0x367   :  { %v945_v56 = vpop.eup %944  ;;  %v587_v57 = vmul.f32 %v943_v55, %v1242_v13 }
 0x368   :  { %v586_v58 = vmul.f32 %v945_v56, %v1244_v14 }
 0x369   :  { %603 = vst [vmem:[#allocation11 + $0x58] sm:$0xff] %v587_v57 }
 0x36a   :  { %v947_v59 = vpop.eup %946  ;;  %602 = vst [vmem:[#allocation11 + $0x50] sm:$0xff] %v586_v58 }
 0x36b   :  { %v949_v60 = vpop.eup %948  ;;  %v589_v61 = vmul.f32 %v947_v59, %v1248_v15 }
 0x36c   :  { %v588_v62 = vmul.f32 %v949_v60, %v1250_v16 }
 0x36d   :  { %605 = vst [vmem:[#allocation11 + $0x68] sm:$0xff] %v589_v61 }
 0x36e   :  { %v951_v63 = vpop.eup %950  ;;  %604 = vst [vmem:[#allocation11 + $0x60] sm:$0xff] %v588_v62 }
 0x36f   :  { %v953_v0 = vpop.eup %952  ;;  %v591_v1 = vmul.f32 %v951_v63, %v1254_v17 }
 0x370   :  { %v590_v2 = vmul.f32 %v953_v0, %v1256_v18 }
 0x371   :  { %607 = vst [vmem:[#allocation11 + $0x78] sm:$0xff] %v591_v1 }
 0x372   :  { %606 = vst [vmem:[#allocation11 + $0x70] sm:$0xff] %v590_v2 }
 0x373   :  { %1041 = shalt.err (!%p1038_p4)
}
 0x374   :  { %s1042_s29 = scalar_lea.hbm %s1297_s6, 2048 }
 0x375   :  { %p1043_p5 = scmp.ne.s32.totalorder %s1297_s6, %s1042_s29  ;;  %p1046_p6 = scmp.lt.u32.totalorder %s1042_s29, %s1297_s6 }
 0x377   :  { %p1048_p7 = pnand %p1046_p6, %p1043_p5 }
 0x379   :  { %1051 = shalt.err (!%p1048_p7)
}
 0x37a   :  { %619 = dma.vmem_to_hbm [thread:$0]  %s614_s25, 2048, %s1297_s6, [#allocation7], %s1071_s18, %s1071_s18, %s1072_s19  }
 0x37b   :  { %1062 = dma.done.wait [#allocation7], 2048  }
 0x37c   :  { %1063 = vsyncadd [#allocation7], 4294965248 }
 0x37d   :  { %623 = vsyncpa [#allocation6], 1 }
 0x37e   :  { %624 = vsyncpa [#allocation9], 1 }
 0x37f   :  { %625 = vsyncpa [#allocation7], 1 }

</bundles_post_ra>
